<compile_context>
chip_gen: v5e
topology: v5e:2x2
jax: 0.10.0
libtpu: 0.0.40
codegen_flags: <defaults>
</compile_context>

<pallas_src>
import functools

import jax
import jax.numpy as jnp
from jax.experimental import pallas as pl
from jax.experimental.pallas import tpu as pltpu

EPS = 1e-5


def bottleneck_kernel(x_ref, w1_ref, b1_ref, w2_ref, b2_ref, w3_ref, b3_ref,
                      out_ref, *, W, HW):
    HWp = x_ref.shape[-1]                 # lane-padded spatial length

    x = x_ref[0]                          # (Cin, HWp) bf16

    # ---- conv1 (1x1) + folded BN1 + ReLU (f32 accumulate / elementwise) ----
    h1 = jnp.dot(w1_ref[...], x, preferred_element_type=jnp.float32) + b1_ref[...]
    h1 = jnp.maximum(h1, 0.0)             # (Wd, HWp) f32

    col = jax.lax.broadcasted_iota(jnp.int32, (1, HWp), 1)
    if HWp != HW:
        # Zero the lane-padding columns so the 3x3 taps can't pick up
        # relu(bias) values from the pad region.
        h1 = jnp.where(col < HW, h1, 0.0)
    h1b = h1.astype(jnp.bfloat16)

    # ---- conv2 (3x3, pad=1, stride=1) + folded BN2 + ReLU ----
    # Hoisted W-edge masks (2 masked copies reused by all vertical taps);
    # horizontal taps are wrap shifts of the masked copies (the wrapped
    # element is zero by construction of the mask); vertical taps are
    # zero-filled lane shifts of the sublane-stacked tensor.
    w_coord = col % W
    zero_bf16 = jnp.zeros((), jnp.bfloat16)
    h1_m = jnp.where(w_coord != W - 1, h1b, zero_bf16)   # feeds dw=-1 taps
    h1_p = jnp.where(w_coord != 0, h1b, zero_bf16)       # feeds dw=+1 taps

    # result[p] = src[p - 1]  /  result[p] = src[p + 1]   (wrap, masked to 0)
    t_m = jnp.concatenate([h1_m[:, -1:], h1_m[:, :-1]], axis=1)
    t_p = jnp.concatenate([h1_p[:, 1:], h1_p[:, :1]], axis=1)

    # Stack the three horizontal taps along the contraction dim: kw = 0, 1, 2.
    T = jnp.concatenate([t_m, h1b, t_p], axis=0)          # (3*Wd, HWp)

    def vshift(t, dh):
        # result[:, p] = t[:, p + dh*W], zero-filled outside [0, HWp).
        s = dh * W
        z = jnp.zeros((t.shape[0], W), t.dtype)
        if s > 0:
            return jnp.concatenate([t[:, s:], z], axis=1)
        return jnp.concatenate([z, t[:, :s]], axis=1)

    acc = jnp.dot(w2_ref[0], vshift(T, -1), preferred_element_type=jnp.float32)
    acc += jnp.dot(w2_ref[1], T, preferred_element_type=jnp.float32)
    acc += jnp.dot(w2_ref[2], vshift(T, 1), preferred_element_type=jnp.float32)

    h2 = jnp.maximum(acc + b2_ref[...], 0.0)               # (Wd, HWp) f32
    h2b = h2.astype(jnp.bfloat16)

    # ---- conv3 (1x1) + folded BN3 + identity residual + ReLU (f32) ----
    h3 = jnp.dot(w3_ref[...], h2b, preferred_element_type=jnp.float32) + b3_ref[...]
    out_ref[0] = jnp.maximum(h3 + x.astype(jnp.float32), 0.0)


def bottleneck_pallas(x_nchw, p):
    """x_nchw: (N, Cin, H, W) f32 -> (N, Cout, H, W) f32.
    Eval-mode BN; identity residual (stride=1, downsample=None, Cin==Cout)."""
    N, Cin, H, W = x_nchw.shape
    Wd = p["w1"].shape[0]
    Cout = p["w3"].shape[0]
    HW = H * W
    HWp = ((HW + 127) // 128) * 128       # lane-dense output
    assert Cin == Cout, "identity residual path requires Cin == Cout"

    def fold_bn(gamma, beta, mean, var):
        s = gamma / jnp.sqrt(var + EPS)
        return s, beta - mean * s

    s1, t1 = fold_bn(p["g1"], p["be1"], p["m1"], p["v1"])
    s2, t2 = fold_bn(p["g2"], p["be2"], p["m2"], p["v2"])
    s3, t3 = fold_bn(p["g3"], p["be3"], p["m3"], p["v3"])

    # Fold BN scale + conv bias into the weights / per-channel offsets.
    # Matmul operands in bf16; biases/offsets stay f32.
    w1 = (p["w1"][:, :, 0, 0] * s1[:, None]).astype(jnp.bfloat16)        # (Wd, Cin)
    b1 = (p["b1"] * s1 + t1)[:, None].astype(jnp.float32)                # (Wd, 1)
    w2_t = jnp.transpose(p["w2"], (2, 3, 0, 1)) * s2[None, None, :, None]  # (kh,kw,O,I)
    w2s = jnp.concatenate([w2_t[:, 0], w2_t[:, 1], w2_t[:, 2]],
                          axis=-1).astype(jnp.bfloat16)                  # (3, Wd, 3*Wd)
    b2 = t2[:, None].astype(jnp.float32)                                 # (Wd, 1)
    w3 = (p["w3"][:, :, 0, 0] * s3[:, None]).astype(jnp.bfloat16)        # (Cout, Wd)
    b3 = (p["b3"] * s3 + t3)[:, None].astype(jnp.float32)                # (Cout, 1)

    x = x_nchw.reshape(N, Cin, HW).astype(jnp.bfloat16)   # contiguous, no transpose
    if HWp != HW:
        x = jnp.pad(x, ((0, 0), (0, 0), (0, HWp - HW)))

    kernel = functools.partial(bottleneck_kernel, W=W, HW=HW)

    def call(single_buffer_consts):
        def const(shape):
            nd = len(shape)
            idx = lambda n, _nd=nd: (0,) * _nd
            if single_buffer_consts:
                return pl.BlockSpec(shape, idx, pipeline_mode=pl.Buffered(1))
            return pl.BlockSpec(shape, idx)

        return pl.pallas_call(
            kernel,
            out_shape=jax.ShapeDtypeStruct((N, Cout, HWp), jnp.float32),
            grid_spec=pltpu.PrefetchScalarGridSpec(
                num_scalar_prefetch=0,
                grid=(N,),
                in_specs=[
                    pl.BlockSpec((1, Cin, HWp), lambda n: (n, 0, 0)),
                    const((Wd, Cin)), const((Wd, 1)),
                    const((3, Wd, 3 * Wd)), const((Wd, 1)),
                    const((Cout, Wd)), const((Cout, 1)),
                ],
                out_specs=pl.BlockSpec((1, Cout, HWp), lambda n: (n, 0, 0)),
            ),
            compiler_params=pltpu.CompilerParams(
                dimension_semantics=("parallel",),
                vmem_limit_bytes=48 * 1024 * 1024),
        )(x, w1, b1, w2s, b2, w3, b3)

    try:
        out = call(True)          # single-buffered constant weights
    except Exception:             # pipeline_mode/Buffered(1) unsupported on this build
        out = call(False)

    return out[:, :, :HW].reshape(N, Cout, H, W)


# ---------------- pure-JAX reference (mirrors the PyTorch forward) ----------
def bottleneck_ref(x, p):
    def conv(x, w, b=None, pad=0):
        y = jax.lax.conv_general_dilated(
            x, w, window_strides=(1, 1), padding=[(pad, pad), (pad, pad)],
            dimension_numbers=("NCHW", "OIHW", "NCHW"))
        if b is not None:
            y = y + b[None, :, None, None]
        return y

    def bn(x, g, b, m, v):
        return ((x - m[None, :, None, None]) /
                jnp.sqrt(v[None, :, None, None] + EPS)) * g[None, :, None, None] \
               + b[None, :, None, None]

    identity = x
    out = jnp.maximum(bn(conv(x, p["w1"], p["b1"]), p["g1"], p["be1"], p["m1"], p["v1"]), 0.0)
    out = jnp.maximum(bn(conv(out, p["w2"], None, pad=1), p["g2"], p["be2"], p["m2"], p["v2"]), 0.0)
    out = bn(conv(out, p["w3"], p["b3"]), p["g3"], p["be3"], p["m3"], p["v3"])
    return jnp.maximum(out + identity, 0.0)


if __name__ == "__main__":
    # Bottleneck(in_channels=64, std_channels=16): width=16, out=16*4=64,
    # stride=1, downsample=None -> identity add is shape-compatible.
    N, Cin, H, W = 2, 64, 8, 8
    std_c = 16
    width = std_c            # base_width=64, groups=1
    Cout = std_c * 4         # == Cin

    key = jax.random.PRNGKey(0)
    ks = jax.random.split(key, 16)

    def rnd(k, shape, scale=0.1):
        return (scale * jax.random.normal(k, shape)).astype(jnp.float32)

    params = {
        "w1": rnd(ks[0], (width, Cin, 1, 1)),
        "b1": rnd(ks[1], (width,)),
        "g1": 1.0 + rnd(ks[2], (width,)),
        "be1": rnd(ks[3], (width,)),
        "m1": rnd(ks[4], (width,)),
        "v1": 0.5 + jnp.abs(rnd(ks[5], (width,))),
        "w2": rnd(ks[6], (width, width, 3, 3)),
        "g2": 1.0 + rnd(ks[7], (width,)),
        "be2": rnd(ks[8], (width,)),
        "m2": rnd(ks[9], (width,)),
        "v2": 0.5 + jnp.abs(rnd(ks[10], (width,))),
        "w3": rnd(ks[11], (Cout, width, 1, 1)),
        "b3": rnd(ks[12], (Cout,)),
        "g3": 1.0 + rnd(ks[13], (Cout,)),
        "be3": rnd(ks[14], (Cout,)),
        "m3": rnd(ks[15], (Cout,)),
        "v3": 0.5 + jnp.abs(rnd(jax.random.PRNGKey(99), (Cout,))),
    }

    x = jax.random.normal(jax.random.PRNGKey(1), (N, Cin, H, W), jnp.float32)

    out = jax.block_until_ready(bottleneck_pallas(x, params))
    ref = jax.block_until_ready(bottleneck_ref(x, params))

    assert out.shape == (N, Cout, H, W), out.shape
    # bf16 matmul operands + bf16-quantized input -> looser tolerance than f32.
    err = float(jnp.max(jnp.abs(out - ref)))
    assert jnp.allclose(out, ref, atol=7e-2, rtol=7e-2), err
    print("KERNEL_OK")
</pallas_src>

<mosaic_0001>
module attributes {stable_mosaic.version = 11 : i64} {
  func.func @bottleneck_kernel(%arg0: i32, %arg1: memref<1x64x128xbf16, #tpu.memory_space<vmem>>, %arg2: memref<16x64xbf16, #tpu.memory_space<vmem>>, %arg3: memref<16x1xf32, #tpu.memory_space<vmem>>, %arg4: memref<3x16x48xbf16, #tpu.memory_space<vmem>>, %arg5: memref<16x1xf32, #tpu.memory_space<vmem>>, %arg6: memref<64x16xbf16, #tpu.memory_space<vmem>>, %arg7: memref<64x1xf32, #tpu.memory_space<vmem>>, %arg8: memref<1x64x128xf32, #tpu.memory_space<vmem>>) attributes {dimension_semantics = [#tpu.dimension_semantics<parallel>], iteration_bounds = array<i64: 2>, scalar_prefetch = 0 : i64, scratch_operands = 0 : i64, tpu.core_type = #tpu.core_type<tc>, window_params = [{transform_indices = @transform_0, window_bounds = array<i64: 1, 64, 128>}, {pipeline_mode = #tpu.pipeline_mode<synchronous>, transform_indices = @transform_1, window_bounds = array<i64: 16, 64>}, {pipeline_mode = #tpu.pipeline_mode<synchronous>, transform_indices = @transform_2, window_bounds = array<i64: 16, 1>}, {pipeline_mode = #tpu.pipeline_mode<synchronous>, transform_indices = @transform_3, window_bounds = array<i64: 3, 16, 48>}, {pipeline_mode = #tpu.pipeline_mode<synchronous>, transform_indices = @transform_4, window_bounds = array<i64: 16, 1>}, {pipeline_mode = #tpu.pipeline_mode<synchronous>, transform_indices = @transform_5, window_bounds = array<i64: 64, 16>}, {pipeline_mode = #tpu.pipeline_mode<synchronous>, transform_indices = @transform_6, window_bounds = array<i64: 64, 1>}, {transform_indices = @transform_7, window_bounds = array<i64: 1, 64, 128>}]} {
    %c0 = arith.constant 0 : index
    %c0_0 = arith.constant 0 : index
    %c0_1 = arith.constant 0 : index
    %0 = vector.load %arg1[%c0, %c0_0, %c0_1] : memref<1x64x128xbf16, #tpu.memory_space<vmem>>, vector<1x64x128xbf16>
    %1 = vector.shape_cast %0 : vector<1x64x128xbf16> to vector<64x128xbf16>
    %c0_2 = arith.constant 0 : index
    %c0_3 = arith.constant 0 : index
    %2 = vector.load %arg2[%c0_2, %c0_3] : memref<16x64xbf16, #tpu.memory_space<vmem>>, vector<16x64xbf16>
    %cst = arith.constant dense<0.000000e+00> : vector<16x128xf32>
    %3 = tpu.matmul %2, %1, %cst {dimension_numbers = #tpu.dot_dimension_numbers<[1], [0], [0], [1], [0, 0, 1, 1], [], []>} : vector<16x64xbf16>, vector<64x128xbf16>, vector<16x128xf32> -> vector<16x128xf32>
    %c0_4 = arith.constant 0 : index
    %c0_5 = arith.constant 0 : index
    %4 = vector.load %arg3[%c0_4, %c0_5] : memref<16x1xf32, #tpu.memory_space<vmem>>, vector<16x1xf32>
    %5 = vector.broadcast %4 : vector<16x1xf32> to vector<16x128xf32>
    %6 = arith.addf %3, %5 : vector<16x128xf32>
    %cst_6 = arith.constant 0.000000e+00 : f32
    %7 = vector.broadcast %cst_6 : f32 to vector<16x128xf32>
    %8 = arith.maximumf %6, %7 : vector<16x128xf32>
    %9 = tpu.iota {dimensions = array<i32: 1>} : vector<1x128xi32>
    %c64_i32 = arith.constant 64 : i32
    %10 = vector.broadcast %c64_i32 : i32 to vector<1x128xi32>
    %11 = arith.cmpi slt, %9, %10 : vector<1x128xi32>
    %cst_7 = arith.constant 0.000000e+00 : f32
    %12 = vector.shape_cast %11 : vector<1x128xi1> to vector<1x128xi1>
    %13 = vector.broadcast %12 : vector<1x128xi1> to vector<16x128xi1>
    %14 = vector.broadcast %cst_7 : f32 to vector<16x128xf32>
    %15 = arith.select %13, %8, %14 : vector<16x128xi1>, vector<16x128xf32>
    %16 = arith.truncf %15 : vector<16x128xf32> to vector<16x128xbf16>
    %c8_i32 = arith.constant 8 : i32
    %c0_i32 = arith.constant 0 : i32
    %17 = arith.cmpi eq, %c8_i32, %c0_i32 : i32
    %c1_i32 = arith.constant 1 : i32
    %18 = arith.select %17, %c1_i32, %c8_i32 : i32
    %19 = vector.broadcast %18 : i32 to vector<1x128xi32>
    %20 = arith.remsi %9, %19 : vector<1x128xi32>
    %c0_i32_8 = arith.constant 0 : i32
    %21 = vector.broadcast %c0_i32_8 : i32 to vector<1x128xi32>
    %22 = arith.cmpi ne, %20, %21 : vector<1x128xi32>
    %c0_i32_9 = arith.constant 0 : i32
    %23 = vector.broadcast %c0_i32_9 : i32 to vector<1x128xi32>
    %24 = arith.cmpi slt, %20, %23 : vector<1x128xi32>
    %c0_i32_10 = arith.constant 0 : i32
    %25 = arith.cmpi slt, %18, %c0_i32_10 : i32
    %26 = vector.broadcast %25 : i1 to vector<1x128xi1>
    %27 = vector.broadcast %26 : vector<1x128xi1> to vector<1x128xi1>
    %28 = arith.xori %24, %27 : vector<1x128xi1>
    %29 = arith.andi %28, %22 : vector<1x128xi1>
    %30 = vector.broadcast %18 : i32 to vector<1x128xi32>
    %31 = arith.addi %20, %30 : vector<1x128xi32>
    %32 = arith.select %29, %31, %20 : vector<1x128xi1>, vector<1x128xi32>
    %c7_i32 = arith.constant 7 : i32
    %33 = vector.broadcast %c7_i32 : i32 to vector<1x128xi32>
    %34 = arith.cmpi ne, %32, %33 : vector<1x128xi32>
    %cst_11 = arith.constant 0.000000e+00 : bf16
    %35 = vector.shape_cast %34 : vector<1x128xi1> to vector<1x128xi1>
    %36 = vector.broadcast %35 : vector<1x128xi1> to vector<16x128xi1>
    %37 = vector.broadcast %cst_11 : bf16 to vector<16x128xbf16>
    %38 = arith.select %36, %16, %37 : vector<16x128xi1>, vector<16x128xbf16>
    %c0_i32_12 = arith.constant 0 : i32
    %39 = vector.broadcast %c0_i32_12 : i32 to vector<1x128xi32>
    %40 = arith.cmpi ne, %32, %39 : vector<1x128xi32>
    %cst_13 = arith.constant 0.000000e+00 : bf16
    %41 = vector.shape_cast %40 : vector<1x128xi1> to vector<1x128xi1>
    %42 = vector.broadcast %41 : vector<1x128xi1> to vector<16x128xi1>
    %43 = vector.broadcast %cst_13 : bf16 to vector<16x128xbf16>
    %44 = arith.select %42, %16, %43 : vector<16x128xi1>, vector<16x128xbf16>
    %45 = vector.extract_strided_slice %38 {offsets = [0, 127], sizes = [16, 1], strides = [1, 1]} : vector<16x128xbf16> to vector<16x1xbf16>
    %46 = vector.extract_strided_slice %38 {offsets = [0, 0], sizes = [16, 127], strides = [1, 1]} : vector<16x128xbf16> to vector<16x127xbf16>
    %47 = tpu.concatenate %45, %46 in 1 : vector<16x1xbf16>, vector<16x127xbf16> -> vector<16x128xbf16>
    %48 = vector.extract_strided_slice %44 {offsets = [0, 1], sizes = [16, 127], strides = [1, 1]} : vector<16x128xbf16> to vector<16x127xbf16>
    %49 = vector.extract_strided_slice %44 {offsets = [0, 0], sizes = [16, 1], strides = [1, 1]} : vector<16x128xbf16> to vector<16x1xbf16>
    %50 = tpu.concatenate %48, %49 in 1 : vector<16x127xbf16>, vector<16x1xbf16> -> vector<16x128xbf16>
    %51 = tpu.concatenate %47, %16, %50 in 0 : vector<16x128xbf16>, vector<16x128xbf16>, vector<16x128xbf16> -> vector<48x128xbf16>
    %c0_14 = arith.constant 0 : index
    %c0_15 = arith.constant 0 : index
    %c0_16 = arith.constant 0 : index
    %52 = vector.load %arg4[%c0_14, %c0_15, %c0_16] : memref<3x16x48xbf16, #tpu.memory_space<vmem>>, vector<1x16x48xbf16>
    %53 = vector.shape_cast %52 : vector<1x16x48xbf16> to vector<16x48xbf16>
    %cst_17 = arith.constant 0.000000e+00 : bf16
    %54 = vector.broadcast %cst_17 : bf16 to vector<48x8xbf16>
    %55 = vector.extract_strided_slice %51 {offsets = [0, 0], sizes = [48, 120], strides = [1, 1]} : vector<48x128xbf16> to vector<48x120xbf16>
    %56 = tpu.concatenate %54, %55 in 1 : vector<48x8xbf16>, vector<48x120xbf16> -> vector<48x128xbf16>
    %cst_18 = arith.constant dense<0.000000e+00> : vector<16x128xf32>
    %57 = tpu.matmul %53, %56, %cst_18 {dimension_numbers = #tpu.dot_dimension_numbers<[1], [0], [0], [1], [0, 0, 1, 1], [], []>} : vector<16x48xbf16>, vector<48x128xbf16>, vector<16x128xf32> -> vector<16x128xf32>
    %c1 = arith.constant 1 : index
    %c0_19 = arith.constant 0 : index
    %c0_20 = arith.constant 0 : index
    %58 = vector.load %arg4[%c1, %c0_19, %c0_20] : memref<3x16x48xbf16, #tpu.memory_space<vmem>>, vector<1x16x48xbf16>
    %59 = vector.shape_cast %58 : vector<1x16x48xbf16> to vector<16x48xbf16>
    %cst_21 = arith.constant dense<0.000000e+00> : vector<16x128xf32>
    %60 = tpu.matmul %59, %51, %cst_21 {dimension_numbers = #tpu.dot_dimension_numbers<[1], [0], [0], [1], [0, 0, 1, 1], [], []>} : vector<16x48xbf16>, vector<48x128xbf16>, vector<16x128xf32> -> vector<16x128xf32>
    %61 = arith.addf %57, %60 : vector<16x128xf32>
    %c2 = arith.constant 2 : index
    %c0_22 = arith.constant 0 : index
    %c0_23 = arith.constant 0 : index
    %62 = vector.load %arg4[%c2, %c0_22, %c0_23] : memref<3x16x48xbf16, #tpu.memory_space<vmem>>, vector<1x16x48xbf16>
    %63 = vector.shape_cast %62 : vector<1x16x48xbf16> to vector<16x48xbf16>
    %cst_24 = arith.constant 0.000000e+00 : bf16
    %64 = vector.broadcast %cst_24 : bf16 to vector<48x8xbf16>
    %65 = vector.extract_strided_slice %51 {offsets = [0, 8], sizes = [48, 120], strides = [1, 1]} : vector<48x128xbf16> to vector<48x120xbf16>
    %66 = tpu.concatenate %65, %64 in 1 : vector<48x120xbf16>, vector<48x8xbf16> -> vector<48x128xbf16>
    %cst_25 = arith.constant dense<0.000000e+00> : vector<16x128xf32>
    %67 = tpu.matmul %63, %66, %cst_25 {dimension_numbers = #tpu.dot_dimension_numbers<[1], [0], [0], [1], [0, 0, 1, 1], [], []>} : vector<16x48xbf16>, vector<48x128xbf16>, vector<16x128xf32> -> vector<16x128xf32>
    %68 = arith.addf %61, %67 : vector<16x128xf32>
    %c0_26 = arith.constant 0 : index
    %c0_27 = arith.constant 0 : index
    %69 = vector.load %arg5[%c0_26, %c0_27] : memref<16x1xf32, #tpu.memory_space<vmem>>, vector<16x1xf32>
    %70 = vector.broadcast %69 : vector<16x1xf32> to vector<16x128xf32>
    %71 = arith.addf %68, %70 : vector<16x128xf32>
    %cst_28 = arith.constant 0.000000e+00 : f32
    %72 = vector.broadcast %cst_28 : f32 to vector<16x128xf32>
    %73 = arith.maximumf %71, %72 : vector<16x128xf32>
    %74 = arith.truncf %73 : vector<16x128xf32> to vector<16x128xbf16>
    %c0_29 = arith.constant 0 : index
    %c0_30 = arith.constant 0 : index
    %75 = vector.load %arg6[%c0_29, %c0_30] : memref<64x16xbf16, #tpu.memory_space<vmem>>, vector<64x16xbf16>
    %cst_31 = arith.constant dense<0.000000e+00> : vector<64x128xf32>
    %76 = tpu.matmul %75, %74, %cst_31 {dimension_numbers = #tpu.dot_dimension_numbers<[1], [0], [0], [1], [0, 0, 1, 1], [], []>} : vector<64x16xbf16>, vector<16x128xbf16>, vector<64x128xf32> -> vector<64x128xf32>
    %c0_32 = arith.constant 0 : index
    %c0_33 = arith.constant 0 : index
    %77 = vector.load %arg7[%c0_32, %c0_33] : memref<64x1xf32, #tpu.memory_space<vmem>>, vector<64x1xf32>
    %78 = vector.broadcast %77 : vector<64x1xf32> to vector<64x128xf32>
    %79 = arith.addf %76, %78 : vector<64x128xf32>
    %80 = arith.extf %1 : vector<64x128xbf16> to vector<64x128xf32>
    %81 = arith.addf %79, %80 : vector<64x128xf32>
    %cst_34 = arith.constant 0.000000e+00 : f32
    %82 = vector.broadcast %cst_34 : f32 to vector<64x128xf32>
    %83 = arith.maximumf %81, %82 : vector<64x128xf32>
    %c0_35 = arith.constant 0 : index
    %c0_36 = arith.constant 0 : index
    %c0_37 = arith.constant 0 : index
    %84 = vector.load %arg8[%c0_35, %c0_36, %c0_37] : memref<1x64x128xf32, #tpu.memory_space<vmem>>, vector<1x64x128xf32>
    %85 = vector.shape_cast %84 : vector<1x64x128xf32> to vector<64x128xf32>
    %86 = vector.shape_cast %83 : vector<64x128xf32> to vector<1x64x128xf32>
    tpu.vector_store %arg8[%c0_35, %c0_36, %c0_37], %86 {strides = array<i32>} : memref<1x64x128xf32, #tpu.memory_space<vmem>>, vector<1x64x128xf32>,
    return
  }
  func.func @transform_0(%arg0: i32) -> (i32, i32, i32) {
    %c0_i32 = arith.constant 0 : i32
    %c0_i32_0 = arith.constant 0 : i32
    %c0_i32_1 = arith.constant 0 : i32
    return %arg0, %c0_i32, %c0_i32_0 : i32, i32, i32
  }
  func.func @transform_1(%arg0: i32) -> (i32, i32) {
    %c0_i32 = arith.constant 0 : i32
    %c0_i32_0 = arith.constant 0 : i32
    %c0_i32_1 = arith.constant 0 : i32
    return %c0_i32, %c0_i32_0 : i32, i32
  }
  func.func @transform_2(%arg0: i32) -> (i32, i32) {
    %c0_i32 = arith.constant 0 : i32
    %c0_i32_0 = arith.constant 0 : i32
    %c0_i32_1 = arith.constant 0 : i32
    return %c0_i32, %c0_i32_0 : i32, i32
  }
  func.func @transform_3(%arg0: i32) -> (i32, i32, i32) {
    %c0_i32 = arith.constant 0 : i32
    %c0_i32_0 = arith.constant 0 : i32
    %c0_i32_1 = arith.constant 0 : i32
    %c0_i32_2 = arith.constant 0 : i32
    return %c0_i32, %c0_i32_0, %c0_i32_1 : i32, i32, i32
  }
  func.func @transform_4(%arg0: i32) -> (i32, i32) {
    %c0_i32 = arith.constant 0 : i32
    %c0_i32_0 = arith.constant 0 : i32
    %c0_i32_1 = arith.constant 0 : i32
    return %c0_i32, %c0_i32_0 : i32, i32
  }
  func.func @transform_5(%arg0: i32) -> (i32, i32) {
    %c0_i32 = arith.constant 0 : i32
    %c0_i32_0 = arith.constant 0 : i32
    %c0_i32_1 = arith.constant 0 : i32
    return %c0_i32, %c0_i32_0 : i32, i32
  }
  func.func @transform_6(%arg0: i32) -> (i32, i32) {
    %c0_i32 = arith.constant 0 : i32
    %c0_i32_0 = arith.constant 0 : i32
    %c0_i32_1 = arith.constant 0 : i32
    return %c0_i32, %c0_i32_0 : i32, i32
  }
  func.func @transform_7(%arg0: i32) -> (i32, i32, i32) {
    %c0_i32 = arith.constant 0 : i32
    %c0_i32_0 = arith.constant 0 : i32
    %c0_i32_1 = arith.constant 0 : i32
    return %arg0, %c0_i32, %c0_i32_0 : i32, i32, i32
  }
}

module attributes {stable_mosaic.version = 11 : i64} {
  func.func @bottleneck_kernel(%arg0: i32, %arg1: memref<1x64x128xbf16, #tpu.memory_space<vmem>>, %arg2: memref<16x64xbf16, #tpu.memory_space<vmem>>, %arg3: memref<16x1xf32, #tpu.memory_space<vmem>>, %arg4: memref<3x16x48xbf16, #tpu.memory_space<vmem>>, %arg5: memref<16x1xf32, #tpu.memory_space<vmem>>, %arg6: memref<64x16xbf16, #tpu.memory_space<vmem>>, %arg7: memref<64x1xf32, #tpu.memory_space<vmem>>, %arg8: memref<1x64x128xf32, #tpu.memory_space<vmem>>) attributes {dimension_semantics = [#tpu.dimension_semantics<parallel>], iteration_bounds = array<i64: 2>, scalar_prefetch = 0 : i64, scratch_operands = 0 : i64, tpu.core_type = #tpu.core_type<tc>, window_params = [{transform_indices = @transform_0, window_bounds = array<i64: 1, 64, 128>}, {pipeline_mode = #tpu.pipeline_mode<synchronous>, transform_indices = @transform_1, window_bounds = array<i64: 16, 64>}, {pipeline_mode = #tpu.pipeline_mode<synchronous>, transform_indices = @transform_2, window_bounds = array<i64: 16, 1>}, {pipeline_mode = #tpu.pipeline_mode<synchronous>, transform_indices = @transform_3, window_bounds = array<i64: 3, 16, 48>}, {pipeline_mode = #tpu.pipeline_mode<synchronous>, transform_indices = @transform_4, window_bounds = array<i64: 16, 1>}, {pipeline_mode = #tpu.pipeline_mode<synchronous>, transform_indices = @transform_5, window_bounds = array<i64: 64, 16>}, {pipeline_mode = #tpu.pipeline_mode<synchronous>, transform_indices = @transform_6, window_bounds = array<i64: 64, 1>}, {transform_indices = @transform_7, window_bounds = array<i64: 1, 64, 128>}]} {
    %c0 = arith.constant 0 : index
    %c0_0 = arith.constant 0 : index
    %c0_1 = arith.constant 0 : index
    %0 = vector.load %arg1[%c0, %c0_0, %c0_1] : memref<1x64x128xbf16, #tpu.memory_space<vmem>>, vector<1x64x128xbf16>
    %1 = vector.shape_cast %0 : vector<1x64x128xbf16> to vector<64x128xbf16>
    %c0_2 = arith.constant 0 : index
    %c0_3 = arith.constant 0 : index
    %2 = vector.load %arg2[%c0_2, %c0_3] : memref<16x64xbf16, #tpu.memory_space<vmem>>, vector<16x64xbf16>
    %cst = arith.constant dense<0.000000e+00> : vector<16x128xf32>
    %3 = tpu.matmul %2, %1, %cst {dimension_numbers = #tpu.dot_dimension_numbers<[1], [0], [0], [1], [0, 0, 1, 1], [], []>} : vector<16x64xbf16>, vector<64x128xbf16>, vector<16x128xf32> -> vector<16x128xf32>
    %c0_4 = arith.constant 0 : index
    %c0_5 = arith.constant 0 : index
    %4 = vector.load %arg3[%c0_4, %c0_5] : memref<16x1xf32, #tpu.memory_space<vmem>>, vector<16x1xf32>
    %5 = vector.broadcast %4 : vector<16x1xf32> to vector<16x128xf32>
    %6 = arith.addf %3, %5 : vector<16x128xf32>
    %cst_6 = arith.constant 0.000000e+00 : f32
    %7 = vector.broadcast %cst_6 : f32 to vector<16x128xf32>
    %8 = arith.maximumf %6, %7 : vector<16x128xf32>
    %9 = tpu.iota {dimensions = array<i32: 1>} : vector<1x128xi32>
    %c64_i32 = arith.constant 64 : i32
    %10 = vector.broadcast %c64_i32 : i32 to vector<1x128xi32>
    %11 = arith.cmpi slt, %9, %10 : vector<1x128xi32>
    %cst_7 = arith.constant 0.000000e+00 : f32
    %12 = vector.shape_cast %11 : vector<1x128xi1> to vector<1x128xi1>
    %13 = vector.broadcast %12 : vector<1x128xi1> to vector<16x128xi1>
    %14 = vector.broadcast %cst_7 : f32 to vector<16x128xf32>
    %15 = arith.select %13, %8, %14 : vector<16x128xi1>, vector<16x128xf32>
    %16 = arith.truncf %15 : vector<16x128xf32> to vector<16x128xbf16>
    %c8_i32 = arith.constant 8 : i32
    %c0_i32 = arith.constant 0 : i32
    %17 = arith.cmpi eq, %c8_i32, %c0_i32 : i32
    %c1_i32 = arith.constant 1 : i32
    %18 = arith.select %17, %c1_i32, %c8_i32 : i32
    %19 = vector.broadcast %18 : i32 to vector<1x128xi32>
    %20 = arith.remsi %9, %19 : vector<1x128xi32>
    %c0_i32_8 = arith.constant 0 : i32
    %21 = vector.broadcast %c0_i32_8 : i32 to vector<1x128xi32>
    %22 = arith.cmpi ne, %20, %21 : vector<1x128xi32>
    %c0_i32_9 = arith.constant 0 : i32
    %23 = vector.broadcast %c0_i32_9 : i32 to vector<1x128xi32>
    %24 = arith.cmpi slt, %20, %23 : vector<1x128xi32>
    %c0_i32_10 = arith.constant 0 : i32
    %25 = arith.cmpi slt, %18, %c0_i32_10 : i32
    %26 = vector.broadcast %25 : i1 to vector<1x128xi1>
    %27 = vector.broadcast %26 : vector<1x128xi1> to vector<1x128xi1>
    %28 = arith.xori %24, %27 : vector<1x128xi1>
    %29 = arith.andi %28, %22 : vector<1x128xi1>
    %30 = vector.broadcast %18 : i32 to vector<1x128xi32>
    %31 = arith.addi %20, %30 : vector<1x128xi32>
    %32 = arith.select %29, %31, %20 : vector<1x128xi1>, vector<1x128xi32>
    %c7_i32 = arith.constant 7 : i32
    %33 = vector.broadcast %c7_i32 : i32 to vector<1x128xi32>
    %34 = arith.cmpi ne, %32, %33 : vector<1x128xi32>
    %cst_11 = arith.constant 0.000000e+00 : bf16
    %35 = vector.shape_cast %34 : vector<1x128xi1> to vector<1x128xi1>
    %36 = vector.broadcast %35 : vector<1x128xi1> to vector<16x128xi1>
    %37 = vector.broadcast %cst_11 : bf16 to vector<16x128xbf16>
    %38 = arith.select %36, %16, %37 : vector<16x128xi1>, vector<16x128xbf16>
    %c0_i32_12 = arith.constant 0 : i32
    %39 = vector.broadcast %c0_i32_12 : i32 to vector<1x128xi32>
    %40 = arith.cmpi ne, %32, %39 : vector<1x128xi32>
    %cst_13 = arith.constant 0.000000e+00 : bf16
    %41 = vector.shape_cast %40 : vector<1x128xi1> to vector<1x128xi1>
    %42 = vector.broadcast %41 : vector<1x128xi1> to vector<16x128xi1>
    %43 = vector.broadcast %cst_13 : bf16 to vector<16x128xbf16>
    %44 = arith.select %42, %16, %43 : vector<16x128xi1>, vector<16x128xbf16>
    %45 = vector.extract_strided_slice %38 {offsets = [0, 127], sizes = [16, 1], strides = [1, 1]} : vector<16x128xbf16> to vector<16x1xbf16>
    %46 = vector.extract_strided_slice %38 {offsets = [0, 0], sizes = [16, 127], strides = [1, 1]} : vector<16x128xbf16> to vector<16x127xbf16>
    %47 = tpu.concatenate %45, %46 in 1 : vector<16x1xbf16>, vector<16x127xbf16> -> vector<16x128xbf16>
    %48 = vector.extract_strided_slice %44 {offsets = [0, 1], sizes = [16, 127], strides = [1, 1]} : vector<16x128xbf16> to vector<16x127xbf16>
    %49 = vector.extract_strided_slice %44 {offsets = [0, 0], sizes = [16, 1], strides = [1, 1]} : vector<16x128xbf16> to vector<16x1xbf16>
    %50 = tpu.concatenate %48, %49 in 1 : vector<16x127xbf16>, vector<16x1xbf16> -> vector<16x128xbf16>
    %51 = tpu.concatenate %47, %16, %50 in 0 : vector<16x128xbf16>, vector<16x128xbf16>, vector<16x128xbf16> -> vector<48x128xbf16>
    %c0_14 = arith.constant 0 : index
    %c0_15 = arith.constant 0 : index
    %c0_16 = arith.constant 0 : index
    %52 = vector.load %arg4[%c0_14, %c0_15, %c0_16] : memref<3x16x48xbf16, #tpu.memory_space<vmem>>, vector<1x16x48xbf16>
    %53 = vector.shape_cast %52 : vector<1x16x48xbf16> to vector<16x48xbf16>
    %cst_17 = arith.constant 0.000000e+00 : bf16
    %54 = vector.broadcast %cst_17 : bf16 to vector<48x8xbf16>
    %55 = vector.extract_strided_slice %51 {offsets = [0, 0], sizes = [48, 120], strides = [1, 1]} : vector<48x128xbf16> to vector<48x120xbf16>
    %56 = tpu.concatenate %54, %55 in 1 : vector<48x8xbf16>, vector<48x120xbf16> -> vector<48x128xbf16>
    %cst_18 = arith.constant dense<0.000000e+00> : vector<16x128xf32>
    %57 = tpu.matmul %53, %56, %cst_18 {dimension_numbers = #tpu.dot_dimension_numbers<[1], [0], [0], [1], [0, 0, 1, 1], [], []>} : vector<16x48xbf16>, vector<48x128xbf16>, vector<16x128xf32> -> vector<16x128xf32>
    %c1 = arith.constant 1 : index
    %c0_19 = arith.constant 0 : index
    %c0_20 = arith.constant 0 : index
    %58 = vector.load %arg4[%c1, %c0_19, %c0_20] : memref<3x16x48xbf16, #tpu.memory_space<vmem>>, vector<1x16x48xbf16>
    %59 = vector.shape_cast %58 : vector<1x16x48xbf16> to vector<16x48xbf16>
    %cst_21 = arith.constant dense<0.000000e+00> : vector<16x128xf32>
    %60 = tpu.matmul %59, %51, %cst_21 {dimension_numbers = #tpu.dot_dimension_numbers<[1], [0], [0], [1], [0, 0, 1, 1], [], []>} : vector<16x48xbf16>, vector<48x128xbf16>, vector<16x128xf32> -> vector<16x128xf32>
    %61 = arith.addf %57, %60 : vector<16x128xf32>
    %c2 = arith.constant 2 : index
    %c0_22 = arith.constant 0 : index
    %c0_23 = arith.constant 0 : index
    %62 = vector.load %arg4[%c2, %c0_22, %c0_23] : memref<3x16x48xbf16, #tpu.memory_space<vmem>>, vector<1x16x48xbf16>
    %63 = vector.shape_cast %62 : vector<1x16x48xbf16> to vector<16x48xbf16>
    %cst_24 = arith.constant 0.000000e+00 : bf16
    %64 = vector.broadcast %cst_24 : bf16 to vector<48x8xbf16>
    %65 = vector.extract_strided_slice %51 {offsets = [0, 8], sizes = [48, 120], strides = [1, 1]} : vector<48x128xbf16> to vector<48x120xbf16>
    %66 = tpu.concatenate %65, %64 in 1 : vector<48x120xbf16>, vector<48x8xbf16> -> vector<48x128xbf16>
    %cst_25 = arith.constant dense<0.000000e+00> : vector<16x128xf32>
    %67 = tpu.matmul %63, %66, %cst_25 {dimension_numbers = #tpu.dot_dimension_numbers<[1], [0], [0], [1], [0, 0, 1, 1], [], []>} : vector<16x48xbf16>, vector<48x128xbf16>, vector<16x128xf32> -> vector<16x128xf32>
    %68 = arith.addf %61, %67 : vector<16x128xf32>
    %c0_26 = arith.constant 0 : index
    %c0_27 = arith.constant 0 : index
    %69 = vector.load %arg5[%c0_26, %c0_27] : memref<16x1xf32, #tpu.memory_space<vmem>>, vector<16x1xf32>
    %70 = vector.broadcast %69 : vector<16x1xf32> to vector<16x128xf32>
    %71 = arith.addf %68, %70 : vector<16x128xf32>
    %cst_28 = arith.constant 0.000000e+00 : f32
    %72 = vector.broadcast %cst_28 : f32 to vector<16x128xf32>
    %73 = arith.maximumf %71, %72 : vector<16x128xf32>
    %74 = arith.truncf %73 : vector<16x128xf32> to vector<16x128xbf16>
    %c0_29 = arith.constant 0 : index
    %c0_30 = arith.constant 0 : index
    %75 = vector.load %arg6[%c0_29, %c0_30] : memref<64x16xbf16, #tpu.memory_space<vmem>>, vector<64x16xbf16>
    %cst_31 = arith.constant dense<0.000000e+00> : vector<64x128xf32>
    %76 = tpu.matmul %75, %74, %cst_31 {dimension_numbers = #tpu.dot_dimension_numbers<[1], [0], [0], [1], [0, 0, 1, 1], [], []>} : vector<64x16xbf16>, vector<16x128xbf16>, vector<64x128xf32> -> vector<64x128xf32>
    %c0_32 = arith.constant 0 : index
    %c0_33 = arith.constant 0 : index
    %77 = vector.load %arg7[%c0_32, %c0_33] : memref<64x1xf32, #tpu.memory_space<vmem>>, vector<64x1xf32>
    %78 = vector.broadcast %77 : vector<64x1xf32> to vector<64x128xf32>
    %79 = arith.addf %76, %78 : vector<64x128xf32>
    %80 = arith.extf %1 : vector<64x128xbf16> to vector<64x128xf32>
    %81 = arith.addf %79, %80 : vector<64x128xf32>
    %cst_34 = arith.constant 0.000000e+00 : f32
    %82 = vector.broadcast %cst_34 : f32 to vector<64x128xf32>
    %83 = arith.maximumf %81, %82 : vector<64x128xf32>
    %c0_35 = arith.constant 0 : index
    %c0_36 = arith.constant 0 : index
    %c0_37 = arith.constant 0 : index
    %84 = vector.load %arg8[%c0_35, %c0_36, %c0_37] : memref<1x64x128xf32, #tpu.memory_space<vmem>>, vector<1x64x128xf32>
    %85 = vector.shape_cast %84 : vector<1x64x128xf32> to vector<64x128xf32>
    %86 = vector.shape_cast %83 : vector<64x128xf32> to vector<1x64x128xf32>
    tpu.vector_store %arg8[%c0_35, %c0_36, %c0_37], %86 {strides = array<i32>} : memref<1x64x128xf32, #tpu.memory_space<vmem>>, vector<1x64x128xf32>,
    return
  }
  func.func @transform_0(%arg0: i32) -> (i32, i32, i32) {
    %c0_i32 = arith.constant 0 : i32
    %c0_i32_0 = arith.constant 0 : i32
    %c0_i32_1 = arith.constant 0 : i32
    return %arg0, %c0_i32, %c0_i32_0 : i32, i32, i32
  }
  func.func @transform_1(%arg0: i32) -> (i32, i32) {
    %c0_i32 = arith.constant 0 : i32
    %c0_i32_0 = arith.constant 0 : i32
    %c0_i32_1 = arith.constant 0 : i32
    return %c0_i32, %c0_i32_0 : i32, i32
  }
  func.func @transform_2(%arg0: i32) -> (i32, i32) {
    %c0_i32 = arith.constant 0 : i32
    %c0_i32_0 = arith.constant 0 : i32
    %c0_i32_1 = arith.constant 0 : i32
    return %c0_i32, %c0_i32_0 : i32, i32
  }
  func.func @transform_3(%arg0: i32) -> (i32, i32, i32) {
    %c0_i32 = arith.constant 0 : i32
    %c0_i32_0 = arith.constant 0 : i32
    %c0_i32_1 = arith.constant 0 : i32
    %c0_i32_2 = arith.constant 0 : i32
    return %c0_i32, %c0_i32_0, %c0_i32_1 : i32, i32, i32
  }
  func.func @transform_4(%arg0: i32) -> (i32, i32) {
    %c0_i32 = arith.constant 0 : i32
    %c0_i32_0 = arith.constant 0 : i32
    %c0_i32_1 = arith.constant 0 : i32
    return %c0_i32, %c0_i32_0 : i32, i32
  }
  func.func @transform_5(%arg0: i32) -> (i32, i32) {
    %c0_i32 = arith.constant 0 : i32
    %c0_i32_0 = arith.constant 0 : i32
    %c0_i32_1 = arith.constant 0 : i32
    return %c0_i32, %c0_i32_0 : i32, i32
  }
  func.func @transform_6(%arg0: i32) -> (i32, i32) {
    %c0_i32 = arith.constant 0 : i32
    %c0_i32_0 = arith.constant 0 : i32
    %c0_i32_1 = arith.constant 0 : i32
    return %c0_i32, %c0_i32_0 : i32, i32
  }
  func.func @transform_7(%arg0: i32) -> (i32, i32, i32) {
    %c0_i32 = arith.constant 0 : i32
    %c0_i32_0 = arith.constant 0 : i32
    %c0_i32_1 = arith.constant 0 : i32
    return %arg0, %c0_i32, %c0_i32_0 : i32, i32, i32
  }
}

</mosaic_0001>

<bundles_post_ra>
// kernel: tpu_custom_call.1
= control target key start
LH: loop header
LB: loop body
LE: loop exit
PB: predicated region body
PF: predicated region fallthrough
CT: control target
= control target key end

     0   :  { %12 = vsyncpa [#allocation3], 0  ;;  %s1194_s0 = inlined_call_operand.vmem [shape: bf16[2,64,128], index: 0, kind: input, shape index: {}]   ;;  %s1195_s1 = inlined_call_operand.vmem [shape: bf16[16,64], index: 1, kind: input, shape index: {}]   ;;  %s1196_s2 = inlined_call_operand.vmem [shape: f32[16,1], index: 2, kind: input, shape index: {}]   ;;  %s1197_s3 = inlined_call_operand.vmem [shape: bf16[3,16,48], index: 3, kind: input, shape index: {}]   ;;  %s1198_s4 = inlined_call_operand.vmem [shape: f32[16,1], index: 4, kind: input, shape index: {}]   ;;  %s1199_s5 = inlined_call_operand.vmem [shape: bf16[64,16], index: 5, kind: input, shape index: {}]   ;;  %s1200_s6 = inlined_call_operand.vmem [shape: f32[64,1], index: 6, kind: input, shape index: {}]   ;;  %s1201_s7 = inlined_call_operand.hbm [shape: f32[2,64,128], index: 7, kind: output, shape index: {}]  }
   0x1   :  { %14 = vsyncpa [#allocation3 + $0x1], 0  ;;  %s1014_s24 = smov 0   ;;  %s1016_s25 = smov 0  }
   0x2   :  { %s1018_s26 = smov 0   ;;  %s1020_s27 = smov 0  }
   0x3 LB: > { %s1035_s28 = sadd.s32 4294967295, %s966_s27   ;;  %s763_s29 = sadd.s32 4294967294, %s966_s27   ;;  %s966_s27 = sphi %s1020_s27, %s1207_s27   ;;  %s962_s26 = sphi %s1018_s26, %s1206_s26   ;;  %s958_s25 = sphi %s1016_s25, %s1205_s25   ;;  %s954_s24 = sphi %s1014_s24, %s1204_s24  }
   0x4   : > { %s1039_s30 = sadd.s32 1, %s966_s27   ;;  %s179_s8 = sadd.s32 1, %s962_s26 }
   0x5   : > { %s176_s9 = ssub.s32 %s966_s27, %s1039_s30  ;;  %p189_p0 = scmp.ne.s32.totalorder %s962_s26, %s958_s25 }
   0x6   : > { %p177_p1 = scmp.eq.s32.totalorder %s176_s9, 0  ;;  %p190_p2 = scmp.eq.s32.totalorder %s1035_s28, 1 }
   0x7   : > { %p195_p3 = scmp.ne.s32.totalorder %s958_s25, %s954_s24  ;;  %p196_p4 = scmp.eq.s32.totalorder %s763_s29, 1 }
   0x8   : > { %s1050_s10 = scalar_select %p177_p1, %s962_s26, %s179_s8  }
   0x9   : > { %p1052_p5 = por %p190_p2, %p189_p0  ;;  %p1056_p6 = por %p196_p4, %p195_p3 }
   0xa   : > { %p766_p7 = scmp.ge.s32.totalorder %s966_s27, 1  ;;  %p240_p8 = scmp.lt.s32.totalorder %s966_s27, 3 }
   0xc   : > { %p241_p9 = pnand %p766_p7, %p240_p8 }
   0xd   : > { %p272_p10 = scmp.lt.s32.totalorder (!%p241_p9), %s1035_s28, 1  ;;  %s969_s29 = smov (!%p241_p9), 127  }
   0xe   : > { %244 = sbr.rel (%p241_p9) target bundleno = 745 (0x2e9), region = 48  ;;  %s970_s8 = smov (!%p241_p9), 1  }
   0xf   : > { %s971_s9 = smov (!%p241_p9), 8   ;;  %s972_s13 = smov (!%p241_p9), 120  }
  0x13   : > { %v288_v0 = vld [vmem:[%s1196_s2] sm:$0xff]  ;;  %v968_v1 = vmov 0   ;;  %s273_s15 = scalar_select %p272_p10, %s1035_s28, 1  ;;  %v289_v3 = vld [vmem:[%s1196_s2 + $0x8] sm:$0xff]  ;;  %vm329_vm0 = vcmask 523264   ;;  %v349_v8 = vlaneseq  ;;  %v546_v39 = vld [vmem:[%s1200_s6 + $0x18] sm:$0xff] }
  0x14   : > { %901 = vset.pattern.permute.xlu0 %v968_v1  ;;  %902 = vset.pattern.permute.xlu1 %v968_v1  ;;  %v846_v7 = vld [vmem:[%s1195_s1] sm:$0xff]  ;;  %v549_v40 = vld [vmem:[%s1200_s6 + $0x30] sm:$0xff]  ;;  %v848_v41 = vld [vmem:[%s1197_s3 + $0x8] sm:$0xff]  ;;  %vm435_vm6 = vcmask 392192   ;;  %vm484_vm7 = vcmask 982016   ;;  %vm416_vm8 = vcmask 64512  }
  0x15   : > { %292 = vperm.xlu0 %901, %v288_v0   ;;  %903 = vset.pattern.permute.xlu2 %v968_v1  ;;  %s841_s16 = sshll.u32 %s273_s15, 5  ;;  %v350_v11 = vand.u32 127, %v349_v8  ;;  %v543_v38 = vld [vmem:[%s1200_s6] sm:$0xff]  ;;  %v544_v47 = vld [vmem:[%s1200_s6 + $0x8] sm:$0xff]  ;;  %vm802_vm9 = vmneg %vm416_vm8  ;;  %vm611_vm10 = vcmask 130048   ;;  %s854_s15 = sshll.u32 %s1035_s28, 6 }
  0x16   : > { %s1070_s19 = scalar_lea.vmem %s1194_s0, %s841_s16  ;;  %v518_v44 = vld [vmem:[%s1198_s4] sm:$0xff]  ;;  %v519_v50 = vld [vmem:[%s1198_s4 + $0x8] sm:$0xff]  ;;  %v550_v52 = vld [vmem:[%s1200_s6 + $0x38] sm:$0xff]  ;;  %s697_s17 = scalar_lea.hbm %s1201_s7, %s854_s15 }
  0x17   : > { %v845_v2 = vld [vmem:[%s1070_s19 + $0x18] sm:$0xff]  ;;  %v844_v4 = vld [vmem:[%s1070_s19 + $0x10] sm:$0xff]  ;;  %v843_v5 = vld [vmem:[%s1070_s19 + $0x8] sm:$0xff]  ;;  %vm351_vm1 = vcmp.lt.s32.totalorder %v350_v11, 64  ;;  %v362_v14 = vand.u32 7, %v350_v11  ;;  %s700_s20 = sshll.u32 %s697_s17, 4  ;;  %s701_s20 = int_to_ptr.hbm [resolvable:$true] %s700_s20 }
  0x18   : > { %337 = vmatpush.bf16.msra.mxu0 %v845_v2  ;;  %v842_v6 = vld [vmem:[%s1070_s19] sm:$0xff]  ;;  %v545_v53 = vld [vmem:[%s1200_s6 + $0x10] sm:$0xff]  ;;  %v548_v59 = vld [vmem:[%s1200_s6 + $0x28] sm:$0xff]  ;;  %s918_s21 = sshra.s32 %s701_s20, 4  ;;  %s919_s21 = int_to_ptr.hbm [resolvable:$true] %s918_s21 }
  0x19   : > { %vm376_vm2 = vcmp.ne.s32.totalorder %v362_v14, 0  ;;  %vm370_vm4 = vcmp.ne.s32.totalorder %v362_v14, 7  ;;  %v547_v49 = vld [vmem:[%s1200_s6 + $0x20] sm:$0xff]  ;;  %v849_v58 = vld [vmem:[%s1197_s3 + $0x10] sm:$0xff]  ;;  %s920_s22 = scalar_lea.hbm %s919_s21, 64  ;;  %p925_p0 = scmp.lt.s32.totalorder %s919_s21, %s1201_s7 }
  0x1a   : > { %vm379_vm3 = vmpackc.low %vm376_vm2, %vm376_vm2  ;;  %v847_v55 = vld [vmem:[%s1197_s3] sm:$0xff]  ;;  %v852_v14 = vld [vmem:[%s1199_s5 + $0x10] sm:$0xff]  ;;  %p921_p11 = scmp.ne.s32.totalorder %s919_s21, %s920_s22 }
  0x1b   : > { %vm373_vm5 = vmpackc.low %vm370_vm4, %vm370_vm4 }
  0x1c   : > { %338 = vmatpush.bf16.msra.mxu0 %v844_v4  ;;  %p922_p12 = pnand %p921_p11, %p1052_p5 }
  0x1d   : > { %297 = vperm.xlu0 %901, %v289_v3  }
  0x1e   : > { %p923_p13 = pneg %p922_p12 }
  0x20   : > { %339 = vmatpush.bf16.msra.mxu0 %v843_v5 }
  0x24   : > { %340 = vmatpush.bf16.msra.mxu0 %v842_v6 }
  0x27   : > { %790 = vmatmul.msk.bf16.vlgmr.msra.gmra.mxu0 %vm329_vm0, %v846_v7 }
  0x87   : > { %v293_v9 = vpop.permute.xlu0 %292 }
  0x8f   : > { %v298_v16 = vpop.permute.xlu0 %297 }
  0xa4   : > { %v342_v10 = vpop.f32.mrf.mxu0 }
  0xa5   : > { %v343_v12 = vadd.f32 %v342_v10, %v293_v9 }
  0xa7   : > { %v347_v13 = vmax.f32 %v343_v12, 0.0 }
  0xa9   : > { %v354_v15 = vsel %vm351_vm1, %v347_v13, 0.0  ;;  %v850_v13 = vld [vmem:[%s1199_s5] sm:$0xff] }
  0xaa   : > { %v356_v19 = vpack.c.bf16 %v354_v15, %v354_v15  ;;  %v851_v15 = vld [vmem:[%s1199_s5 + $0x8] sm:$0xff] }
  0xac   : > { %v344_v17 = vpop.f32.mrf.mxu0  ;;  %v380_v23 = vsel %vm379_vm3, %v356_v19, 0  ;;  %v402_v25 = vunpack.c.l.b16 %v356_v19  ;;  %v374_v32 = vsel %vm373_vm5, %v356_v19, 0 }
  0xad   : > { %v345_v18 = vadd.f32 %v344_v17, %v298_v16  ;;  %v393_v27 = vunpack.c.l.b16 %v380_v23  ;;  %v384_v34 = vunpack.c.l.b16 %v374_v32  ;;  %v853_v16 = vld [vmem:[%s1199_s5 + $0x18] sm:$0xff]  ;;  %v282_v23 = vld [vmem:[%s1070_s19 + $0x10] sm:$0xff]  }
  0xaf   : > { %v348_v20 = vmax.f32 %v345_v18, 0.0  ;;  %v278_v18 = vld [vmem:[%s1070_s19] sm:$0xff]  }
  0xb0   : > { %v653_v19 = vunpack.c.l.bf16 %v278_v18 }
  0xb1   : > { %v355_v21 = vsel %vm351_vm1, %v348_v20, 0.0 }
  0xb2   : > { %v357_v22 = vpack.c.bf16 %v355_v21, %v355_v21 }
  0xb4   : > { %v381_v24 = vsel %vm379_vm3, %v357_v22, 0  ;;  %v403_v26 = vunpack.c.l.b16 %v357_v22  ;;  %v375_v31 = vsel %vm373_vm5, %v357_v22, 0 }
  0xb5   : > { %v394_v28 = vunpack.c.l.b16 %v381_v24  ;;  %v385_v33 = vunpack.c.l.b16 %v375_v31  ;;  %v654_v31 = vunpack.c.h.bf16 %v278_v18 }
  0xb6   : > { %v404_v29 = vpack.c.b16 %v403_v26, %v402_v25 }
  0xb7   : > { %v395_v30 = vpack.c.b16 %v394_v28, %v393_v27  ;;  %v386_v35 = vpack.c.b16 %v385_v33, %v384_v34  ;;  %v657_v27 = vunpack.c.l.bf16 %v282_v23 }
  0xb9   : > { %396 = vrot.lane.b32.xlu1 %v395_v30, %s969_s29 }
  0xc1   : > { %387 = vrot.lane.b32.xlu1 %v386_v35, %s970_s8  ;;  %s269_s8 = sand.u32 1, %s958_s25  }
  0xc2   : > { %s686_s28 = scalar_lea.sflag [#allocation3], %s269_s8 }
 0x12b   : > { %v397_v36 = vpop.permute.xlu1 %396 }
 0x12c   : > { %444 = vmatpush.bf16.msra.mxu3 %v397_v36  ;;  %414 = vrot.lane.b32.xlu0 %v397_v36, %s971_s9 }
 0x12d   : > { %482 = vrot.lane.b32.xlu2 %v397_v36, %s972_s13 }
 0x130   : > { %445 = vmatpush.bf16.msra.mxu3 %v404_v29 }
 0x133   : > { %v388_v37 = vpop.permute.xlu1 %387 }
 0x134   : > { %446 = vmatpush.bf16.msra.mxu3 %v388_v37  ;;  %410 = vrot.lane.b32.xlu0 %v388_v37, %s971_s9 }
 0x135   : > { %480 = vrot.lane.b32.xlu2 %v404_v29, %s972_s13  ;;  %478 = vrot.lane.b32.xlu1 %v388_v37, %s972_s13  ;;  %s767_s13 = sshll.u32 %s269_s8, 6 }
 0x136   : > { %s1147_s14 = scalar_lea.vmem [#allocation2], %s767_s13  ;;  %s924_s13 = scalar_lea.hbm %s1201_s7, 128 }
 0x137   : > { %797 = vmatmul.msk.bf16.vlgmr.msra.gmra.mxu3 %vm435_vm6, %v848_v41  ;;  %s698_s18 = sshll.u32 %s1147_s14, 4  ;;  %p926_p1 = scmp.lt.s32.totalorder %s924_s13, %s920_s22  ;;  %s699_s18 = int_to_ptr.vmem [resolvable:$true] %s698_s18 }
 0x139   : > { %p927_p2 = por %p926_p1, %p925_p0 }
 0x13b   : > { %p928_p3 = pnand %p927_p2, %p923_p13 }
 0x13c   : > { %553 = vperm.xlu0 %901, %v543_v38   ;;  %v280_v38 = vld [vmem:[%s1070_s19 + $0x8] sm:$0xff]  }
 0x13d   : > { %412 = vrot.lane.b32.xlu2 %v404_v29, %s971_s9  ;;  %522 = vperm.xlu1 %902, %v518_v44   ;;  %v655_v44 = vunpack.c.l.bf16 %v280_v38 }
 0x144   : > { %568 = vperm.xlu0 %901, %v546_v39  }
 0x145   : > { %558 = vperm.xlu1 %902, %v544_v47   ;;  %527 = vperm.xlu2 %903, %v519_v50  }
 0x14c   : > { %583 = vperm.xlu0 %901, %v549_v40   ;;  %v658_v40 = vunpack.c.h.bf16 %v282_v23 }
 0x14d   : > { %573 = vperm.xlu1 %902, %v547_v49   ;;  %563 = vperm.xlu2 %903, %v545_v53  }
 0x155   : > { %588 = vperm.xlu1 %902, %v550_v52   ;;  %578 = vperm.xlu2 %903, %v548_v59  }
 0x187   : > { %v483_v42 = vpop.permute.xlu2 %482 }
 0x188   : > { %v492_v43 = vsel %vm484_vm7, %v483_v42, 0 }
 0x189   : > { %507 = vmatpush.bf16.msrb.mxu3 %v492_v43 }
 0x18f   : > { %v481_v45 = vpop.permute.xlu2 %480 }
 0x190   : > { %v489_v46 = vsel %vm484_vm7, %v481_v45, 0 }
 0x191   : > { %508 = vmatpush.bf16.msrb.mxu3 %v489_v46 }
 0x197   : > { %v413_v51 = vpop.permute.xlu2 %412 }
 0x19e   : > { %v415_v48 = vpop.permute.xlu0 %414 }
 0x19f   : > { %803 = vmatpush.bf16.msk.msrb.mxu0 %vm802_vm9, %v415_v48  ;;  %v528_v8 = vpop.permute.xlu2 %527  ;;  %v284_v48 = vld [vmem:[%s1070_s19 + $0x18] sm:$0xff]  }
 0x1a0   : > { %v659_v52 = vunpack.c.l.bf16 %v284_v48 }
 0x1a3   : > { %805 = vmatpush.bf16.msk.msrb.mxu0 %vm802_vm9, %v413_v51 }
 0x1a6   : > { %v411_v54 = vpop.permute.xlu0 %410 }
 0x1a7   : > { %v479_v56 = vpop.permute.xlu1 %478  ;;  %807 = vmatpush.bf16.msk.msrb.mxu0 %vm802_vm9, %v411_v54  ;;  %v564_v25 = vpop.permute.xlu2 %563 }
 0x1a8   : > { %v486_v57 = vsel %vm484_vm7, %v479_v56, 0  ;;  %v656_v56 = vunpack.c.h.bf16 %v280_v38 }
 0x1a9   : > { %509 = vmatpush.bf16.msrb.mxu3 %v486_v57 }
 0x1aa   : > { %808 = vmatmul.msk.bf16.vlgmr.msrb.gmra.mxu0 %vm435_vm6, %v847_v55 }
 0x1ac   : > { %815 = vmatmul.msk.bf16.vlgmr.msrb.gmra.mxu3 %vm435_vm6, %v849_v58 }
 0x1ae   : > { %v554_v20 = vpop.permute.xlu0 %553 }
 0x1af   : > { %v523_v4 = vpop.permute.xlu1 %522  ;;  %v579_v41 = vpop.permute.xlu2 %578 }
 0x1b6   : > { %v569_v37 = vpop.permute.xlu0 %568 }
 0x1b7   : > { %v559_v17 = vpop.permute.xlu1 %558 }
 0x1ba   : > { %v448_v60 = vpop.f32.mrf.mxu3 }
 0x1be   : > { %v584_v53 = vpop.permute.xlu0 %583 }
 0x1bf   : > { %v574_v28 = vpop.permute.xlu1 %573 }
 0x1c2   : > { %v450_v61 = vpop.f32.mrf.mxu3 }
 0x227   : > { %v470_v62 = vpop.f32.mrf.mxu0 }
 0x228   : > { %v471_v0 = vadd.f32 %v470_v62, %v448_v60 }
 0x22f   : > { %v511_v63 = vpop.f32.mrf.mxu3  ;;  %v472_v1 = vpop.f32.mrf.mxu0 }
 0x230   : > { %v516_v2 = vadd.f32 %v511_v63, %v471_v0  ;;  %v473_v3 = vadd.f32 %v472_v1, %v450_v61  ;;  %v660_v63 = vunpack.c.h.bf16 %v284_v48  ;;  %v589_v0 = vpop.permute.xlu1 %588 }
 0x232   : > { %v530_v6 = vadd.f32 %v523_v4, %v516_v2 }
 0x234   : > { %v532_v10 = vmax.f32 %v530_v6, 0.0 }
 0x237   : > { %v513_v5 = vpop.f32.mrf.mxu3 }
 0x238   : > { %v517_v7 = vadd.f32 %v513_v5, %v473_v3 }
 0x23a   : > { %v531_v9 = vadd.f32 %v528_v8, %v517_v7 }
 0x23c   : > { %v533_v11 = vmax.f32 %v531_v9, 0.0 }
 0x23e   : > { %v534_v12 = vpack.c.bf16 %v533_v11, %v532_v10 }
 0x240   : > { %631 = vmatpush.bf16.msra.mxu1 %v534_v12  ;;  %855 = vmatpush.bf16.msra.mxu2 %v534_v12 }
 0x243   : > { %832 = vmatmul.msk.bf16.vlgmr.msra.gmra.mxu1 %vm611_vm10, %v850_v13  ;;  %834 = vmatmul.msk.bf16.vlgmr.msra.gmra.mxu2 %vm611_vm10, %v852_v14 }
 0x253   : > { %833 = vmatmul.msk.bf16.gmra.mxu1 %vm611_vm10, %v851_v15  ;;  %835 = vmatmul.msk.bf16.gmra.mxu2 %vm611_vm10, %v853_v16 }
 0x2c0   : > { %v633_v21 = vpop.f32.mrf.mxu1 }
 0x2c1   : > { %v634_v22 = vadd.f32 %v633_v21, %v554_v20 }
 0x2c3   : > { %v661_v24 = vadd.f32 %v653_v19, %v634_v22 }
 0x2c5   : > { %v669_v26 = vmax.f32 %v661_v24, 0.0 }
 0x2c6   : > { %v643_v29 = vpop.f32.mrf.mxu2 }
 0x2c7   : > { %677 = vst [vmem:[%s1147_s14] sm:$0xff] %v669_v26  ;;  %v644_v30 = vadd.f32 %v643_v29, %v574_v28 }
 0x2c8   : > { %v635_v32 = vpop.f32.mrf.mxu1 }
 0x2c9   : > { %v665_v33 = vadd.f32 %v657_v27, %v644_v30  ;;  %v636_v34 = vadd.f32 %v635_v32, %v559_v17 }
 0x2cb   : > { %v673_v35 = vmax.f32 %v665_v33, 0.0  ;;  %v662_v36 = vadd.f32 %v654_v31, %v636_v34 }
 0x2cd   : > { %681 = vst [vmem:[%s1147_s14 + $0x20] sm:$0xff] %v673_v35  ;;  %v670_v39 = vmax.f32 %v662_v36, 0.0 }
 0x2ce   : > { %v645_v42 = vpop.f32.mrf.mxu2 }
 0x2cf   : > { %678 = vst [vmem:[%s1147_s14 + $0x8] sm:$0xff] %v670_v39  ;;  %v646_v43 = vadd.f32 %v645_v42, %v579_v41 }
 0x2d0   : > { %v638_v45 = vpop.f32.mrf.mxu1 }
 0x2d1   : > { %v666_v46 = vadd.f32 %v658_v40, %v646_v43  ;;  %v639_v47 = vadd.f32 %v638_v45, %v564_v25 }
 0x2d3   : > { %v674_v49 = vmax.f32 %v666_v46, 0.0  ;;  %v663_v50 = vadd.f32 %v655_v44, %v639_v47 }
 0x2d5   : > { %682 = vst [vmem:[%s1147_s14 + $0x28] sm:$0xff] %v674_v49  ;;  %v671_v51 = vmax.f32 %v663_v50, 0.0 }
 0x2d6   : > { %v648_v54 = vpop.f32.mrf.mxu2 }
 0x2d7   : > { %679 = vst [vmem:[%s1147_s14 + $0x10] sm:$0xff] %v671_v51  ;;  %v649_v55 = vadd.f32 %v648_v54, %v584_v53 }
 0x2d8   : > { %v640_v57 = vpop.f32.mrf.mxu1 }
 0x2d9   : > { %v667_v58 = vadd.f32 %v659_v52, %v649_v55  ;;  %v641_v59 = vadd.f32 %v640_v57, %v569_v37 }
 0x2db   : > { %v675_v60 = vmax.f32 %v667_v58, 0.0  ;;  %v664_v61 = vadd.f32 %v656_v56, %v641_v59 }
 0x2dd   : > { %683 = vst [vmem:[%s1147_s14 + $0x30] sm:$0xff] %v675_v60  ;;  %v672_v62 = vmax.f32 %v664_v61, 0.0 }
 0x2de   : > { %v650_v1 = vpop.f32.mrf.mxu2 }
 0x2df   : > { %680 = vst [vmem:[%s1147_s14 + $0x18] sm:$0xff] %v672_v62  ;;  %v651_v2 = vadd.f32 %v650_v1, %v589_v0 }
 0x2e1   : > { %v668_v3 = vadd.f32 %v660_v63, %v651_v2 }
 0x2e3   : > { %v676_v4 = vmax.f32 %v668_v3, 0.0 }
 0x2e5   : > { %684 = vst [vmem:[%s1147_s14 + $0x38] sm:$0xff] %v676_v4 }
 0x2e6   : > { %931 = shalt.err (!%p928_p3)
}
 0x2e7   : > { %s973_s8 = smov 128  }
 0x2e8   : > { %856 = dma.vmem_to_hbm [thread:$0]  (%p1052_p5), %s699_s18, 1024, %s701_s20, %s686_s28, %s973_s8, %s973_s8, %s971_s9  }
 0x2e9 PF: > { %p862_p4 = scmp.ge.s32.totalorder %s966_s27, 2  ;;  %s715_s14 = sand.u32 1, %s954_s24  }
 0x2ea   : > { %s716_s16 = scalar_lea.sflag [#allocation3], %s715_s14 }
 0x2eb   : > { %p859_p7 = pnand %p862_p4, %p1056_p6 }
 0x2ed   : > { %p860_p8 = pneg %p859_p7 }
 0x2ef   : > { %949 = dma.done.wait (%p860_p8), %s716_s16, 1024  }
 0x2f0   : > { %951 = vsyncadd (%p860_p8), %s716_s16, 4294966272  ;;  %p17_p9 = scmp.ge.s32.totalorder %s1039_s30, 4   ;;  %s1204_s24 = smov %s958_s25 }
 0x2f1   : > { %s1205_s25 = smov %s962_s26  ;;  %s1206_s26 = smov %s1050_s10 }
 0x2f2   : > { %s1207_s27 = smov %s1039_s30  ;;  %19 = sbr.rel (!%p17_p9) target bundleno = 3 (0x3), region = 85 }
 0x2f7   :  { %722 = vsyncpa [#allocation3], 1 }
 0x2f8   :  { %724 = vsyncpa [#allocation3 + $0x1], 1 }

// kernel: tpu_custom_call.1
= control target key start
LH: loop header
LB: loop body
LE: loop exit
PB: predicated region body
PF: predicated region fallthrough
CT: control target
= control target key end

     0   :  { %12 = vsyncpa [#allocation3], 0  ;;  %s1194_s0 = inlined_call_operand.vmem [shape: bf16[2,64,128], index: 0, kind: input, shape index: {}]   ;;  %s1195_s1 = inlined_call_operand.vmem [shape: bf16[16,64], index: 1, kind: input, shape index: {}]   ;;  %s1196_s2 = inlined_call_operand.vmem [shape: f32[16,1], index: 2, kind: input, shape index: {}]   ;;  %s1197_s3 = inlined_call_operand.vmem [shape: bf16[3,16,48], index: 3, kind: input, shape index: {}]   ;;  %s1198_s4 = inlined_call_operand.vmem [shape: f32[16,1], index: 4, kind: input, shape index: {}]   ;;  %s1199_s5 = inlined_call_operand.vmem [shape: bf16[64,16], index: 5, kind: input, shape index: {}]   ;;  %s1200_s6 = inlined_call_operand.vmem [shape: f32[64,1], index: 6, kind: input, shape index: {}]   ;;  %s1201_s7 = inlined_call_operand.hbm [shape: f32[2,64,128], index: 7, kind: output, shape index: {}]  }
   0x1   :  { %14 = vsyncpa [#allocation3 + $0x1], 0  ;;  %s1014_s24 = smov 0   ;;  %s1016_s25 = smov 0  }
   0x2   :  { %s1018_s26 = smov 0   ;;  %s1020_s27 = smov 0  }
   0x3 LB: > { %s1035_s28 = sadd.s32 4294967295, %s966_s27   ;;  %s763_s29 = sadd.s32 4294967294, %s966_s27   ;;  %s966_s27 = sphi %s1020_s27, %s1207_s27   ;;  %s962_s26 = sphi %s1018_s26, %s1206_s26   ;;  %s958_s25 = sphi %s1016_s25, %s1205_s25   ;;  %s954_s24 = sphi %s1014_s24, %s1204_s24  }
   0x4   : > { %s1039_s30 = sadd.s32 1, %s966_s27   ;;  %s179_s8 = sadd.s32 1, %s962_s26 }
   0x5   : > { %s176_s9 = ssub.s32 %s966_s27, %s1039_s30  ;;  %p189_p0 = scmp.ne.s32.totalorder %s962_s26, %s958_s25 }
   0x6   : > { %p177_p1 = scmp.eq.s32.totalorder %s176_s9, 0  ;;  %p190_p2 = scmp.eq.s32.totalorder %s1035_s28, 1 }
   0x7   : > { %p195_p3 = scmp.ne.s32.totalorder %s958_s25, %s954_s24  ;;  %p196_p4 = scmp.eq.s32.totalorder %s763_s29, 1 }
   0x8   : > { %s1050_s10 = scalar_select %p177_p1, %s962_s26, %s179_s8  }
   0x9   : > { %p1052_p5 = por %p190_p2, %p189_p0  ;;  %p1056_p6 = por %p196_p4, %p195_p3 }
   0xa   : > { %p766_p7 = scmp.ge.s32.totalorder %s966_s27, 1  ;;  %p240_p8 = scmp.lt.s32.totalorder %s966_s27, 3 }
   0xc   : > { %p241_p9 = pnand %p766_p7, %p240_p8 }
   0xd   : > { %p272_p10 = scmp.lt.s32.totalorder (!%p241_p9), %s1035_s28, 1  ;;  %s969_s29 = smov (!%p241_p9), 127  }
   0xe   : > { %244 = sbr.rel (%p241_p9) target bundleno = 745 (0x2e9), region = 48  ;;  %s970_s8 = smov (!%p241_p9), 1  }
   0xf   : > { %s971_s9 = smov (!%p241_p9), 8   ;;  %s972_s13 = smov (!%p241_p9), 120  }
  0x13   : > { %v288_v0 = vld [vmem:[%s1196_s2] sm:$0xff]  ;;  %v968_v1 = vmov 0   ;;  %s273_s15 = scalar_select %p272_p10, %s1035_s28, 1  ;;  %v289_v3 = vld [vmem:[%s1196_s2 + $0x8] sm:$0xff]  ;;  %vm329_vm0 = vcmask 523264   ;;  %v349_v8 = vlaneseq  ;;  %v546_v39 = vld [vmem:[%s1200_s6 + $0x18] sm:$0xff] }
  0x14   : > { %901 = vset.pattern.permute.xlu0 %v968_v1  ;;  %902 = vset.pattern.permute.xlu1 %v968_v1  ;;  %v846_v7 = vld [vmem:[%s1195_s1] sm:$0xff]  ;;  %v549_v40 = vld [vmem:[%s1200_s6 + $0x30] sm:$0xff]  ;;  %v848_v41 = vld [vmem:[%s1197_s3 + $0x8] sm:$0xff]  ;;  %vm435_vm6 = vcmask 392192   ;;  %vm484_vm7 = vcmask 982016   ;;  %vm416_vm8 = vcmask 64512  }
  0x15   : > { %292 = vperm.xlu0 %901, %v288_v0   ;;  %903 = vset.pattern.permute.xlu2 %v968_v1  ;;  %s841_s16 = sshll.u32 %s273_s15, 5  ;;  %v350_v11 = vand.u32 127, %v349_v8  ;;  %v543_v38 = vld [vmem:[%s1200_s6] sm:$0xff]  ;;  %v544_v47 = vld [vmem:[%s1200_s6 + $0x8] sm:$0xff]  ;;  %vm802_vm9 = vmneg %vm416_vm8  ;;  %vm611_vm10 = vcmask 130048   ;;  %s854_s15 = sshll.u32 %s1035_s28, 6 }
  0x16   : > { %s1070_s19 = scalar_lea.vmem %s1194_s0, %s841_s16  ;;  %v518_v44 = vld [vmem:[%s1198_s4] sm:$0xff]  ;;  %v519_v50 = vld [vmem:[%s1198_s4 + $0x8] sm:$0xff]  ;;  %v550_v52 = vld [vmem:[%s1200_s6 + $0x38] sm:$0xff]  ;;  %s697_s17 = scalar_lea.hbm %s1201_s7, %s854_s15 }
  0x17   : > { %v845_v2 = vld [vmem:[%s1070_s19 + $0x18] sm:$0xff]  ;;  %v844_v4 = vld [vmem:[%s1070_s19 + $0x10] sm:$0xff]  ;;  %v843_v5 = vld [vmem:[%s1070_s19 + $0x8] sm:$0xff]  ;;  %vm351_vm1 = vcmp.lt.s32.totalorder %v350_v11, 64  ;;  %v362_v14 = vand.u32 7, %v350_v11  ;;  %s700_s20 = sshll.u32 %s697_s17, 4  ;;  %s701_s20 = int_to_ptr.hbm [resolvable:$true] %s700_s20 }
  0x18   : > { %337 = vmatpush.bf16.msra.mxu0 %v845_v2  ;;  %v842_v6 = vld [vmem:[%s1070_s19] sm:$0xff]  ;;  %v545_v53 = vld [vmem:[%s1200_s6 + $0x10] sm:$0xff]  ;;  %v548_v59 = vld [vmem:[%s1200_s6 + $0x28] sm:$0xff]  ;;  %s918_s21 = sshra.s32 %s701_s20, 4  ;;  %s919_s21 = int_to_ptr.hbm [resolvable:$true] %s918_s21 }
  0x19   : > { %vm376_vm2 = vcmp.ne.s32.totalorder %v362_v14, 0  ;;  %vm370_vm4 = vcmp.ne.s32.totalorder %v362_v14, 7  ;;  %v547_v49 = vld [vmem:[%s1200_s6 + $0x20] sm:$0xff]  ;;  %v849_v58 = vld [vmem:[%s1197_s3 + $0x10] sm:$0xff]  ;;  %s920_s22 = scalar_lea.hbm %s919_s21, 64  ;;  %p925_p0 = scmp.lt.s32.totalorder %s919_s21, %s1201_s7 }
  0x1a   : > { %vm379_vm3 = vmpackc.low %vm376_vm2, %vm376_vm2  ;;  %v847_v55 = vld [vmem:[%s1197_s3] sm:$0xff]  ;;  %v852_v14 = vld [vmem:[%s1199_s5 + $0x10] sm:$0xff]  ;;  %p921_p11 = scmp.ne.s32.totalorder %s919_s21, %s920_s22 }
  0x1b   : > { %vm373_vm5 = vmpackc.low %vm370_vm4, %vm370_vm4 }
  0x1c   : > { %338 = vmatpush.bf16.msra.mxu0 %v844_v4  ;;  %p922_p12 = pnand %p921_p11, %p1052_p5 }
  0x1d   : > { %297 = vperm.xlu0 %901, %v289_v3  }
  0x1e   : > { %p923_p13 = pneg %p922_p12 }
  0x20   : > { %339 = vmatpush.bf16.msra.mxu0 %v843_v5 }
  0x24   : > { %340 = vmatpush.bf16.msra.mxu0 %v842_v6 }
  0x27   : > { %790 = vmatmul.msk.bf16.vlgmr.msra.gmra.mxu0 %vm329_vm0, %v846_v7 }
  0x87   : > { %v293_v9 = vpop.permute.xlu0 %292 }
  0x8f   : > { %v298_v16 = vpop.permute.xlu0 %297 }
  0xa4   : > { %v342_v10 = vpop.f32.mrf.mxu0 }
  0xa5   : > { %v343_v12 = vadd.f32 %v342_v10, %v293_v9 }
  0xa7   : > { %v347_v13 = vmax.f32 %v343_v12, 0.0 }
  0xa9   : > { %v354_v15 = vsel %vm351_vm1, %v347_v13, 0.0  ;;  %v850_v13 = vld [vmem:[%s1199_s5] sm:$0xff] }
  0xaa   : > { %v356_v19 = vpack.c.bf16 %v354_v15, %v354_v15  ;;  %v851_v15 = vld [vmem:[%s1199_s5 + $0x8] sm:$0xff] }
  0xac   : > { %v344_v17 = vpop.f32.mrf.mxu0  ;;  %v380_v23 = vsel %vm379_vm3, %v356_v19, 0  ;;  %v402_v25 = vunpack.c.l.b16 %v356_v19  ;;  %v374_v32 = vsel %vm373_vm5, %v356_v19, 0 }
  0xad   : > { %v345_v18 = vadd.f32 %v344_v17, %v298_v16  ;;  %v393_v27 = vunpack.c.l.b16 %v380_v23  ;;  %v384_v34 = vunpack.c.l.b16 %v374_v32  ;;  %v853_v16 = vld [vmem:[%s1199_s5 + $0x18] sm:$0xff]  ;;  %v282_v23 = vld [vmem:[%s1070_s19 + $0x10] sm:$0xff]  }
  0xaf   : > { %v348_v20 = vmax.f32 %v345_v18, 0.0  ;;  %v278_v18 = vld [vmem:[%s1070_s19] sm:$0xff]  }
  0xb0   : > { %v653_v19 = vunpack.c.l.bf16 %v278_v18 }
  0xb1   : > { %v355_v21 = vsel %vm351_vm1, %v348_v20, 0.0 }
  0xb2   : > { %v357_v22 = vpack.c.bf16 %v355_v21, %v355_v21 }
  0xb4   : > { %v381_v24 = vsel %vm379_vm3, %v357_v22, 0  ;;  %v403_v26 = vunpack.c.l.b16 %v357_v22  ;;  %v375_v31 = vsel %vm373_vm5, %v357_v22, 0 }
  0xb5   : > { %v394_v28 = vunpack.c.l.b16 %v381_v24  ;;  %v385_v33 = vunpack.c.l.b16 %v375_v31  ;;  %v654_v31 = vunpack.c.h.bf16 %v278_v18 }
  0xb6   : > { %v404_v29 = vpack.c.b16 %v403_v26, %v402_v25 }
  0xb7   : > { %v395_v30 = vpack.c.b16 %v394_v28, %v393_v27  ;;  %v386_v35 = vpack.c.b16 %v385_v33, %v384_v34  ;;  %v657_v27 = vunpack.c.l.bf16 %v282_v23 }
  0xb9   : > { %396 = vrot.lane.b32.xlu1 %v395_v30, %s969_s29 }
  0xc1   : > { %387 = vrot.lane.b32.xlu1 %v386_v35, %s970_s8  ;;  %s269_s8 = sand.u32 1, %s958_s25  }
  0xc2   : > { %s686_s28 = scalar_lea.sflag [#allocation3], %s269_s8 }
 0x12b   : > { %v397_v36 = vpop.permute.xlu1 %396 }
 0x12c   : > { %444 = vmatpush.bf16.msra.mxu3 %v397_v36  ;;  %414 = vrot.lane.b32.xlu0 %v397_v36, %s971_s9 }
 0x12d   : > { %482 = vrot.lane.b32.xlu2 %v397_v36, %s972_s13 }
 0x130   : > { %445 = vmatpush.bf16.msra.mxu3 %v404_v29 }
 0x133   : > { %v388_v37 = vpop.permute.xlu1 %387 }
 0x134   : > { %446 = vmatpush.bf16.msra.mxu3 %v388_v37  ;;  %410 = vrot.lane.b32.xlu0 %v388_v37, %s971_s9 }
 0x135   : > { %480 = vrot.lane.b32.xlu2 %v404_v29, %s972_s13  ;;  %478 = vrot.lane.b32.xlu1 %v388_v37, %s972_s13  ;;  %s767_s13 = sshll.u32 %s269_s8, 6 }
 0x136   : > { %s1147_s14 = scalar_lea.vmem [#allocation2], %s767_s13  ;;  %s924_s13 = scalar_lea.hbm %s1201_s7, 128 }
 0x137   : > { %797 = vmatmul.msk.bf16.vlgmr.msra.gmra.mxu3 %vm435_vm6, %v848_v41  ;;  %s698_s18 = sshll.u32 %s1147_s14, 4  ;;  %p926_p1 = scmp.lt.s32.totalorder %s924_s13, %s920_s22  ;;  %s699_s18 = int_to_ptr.vmem [resolvable:$true] %s698_s18 }
 0x139   : > { %p927_p2 = por %p926_p1, %p925_p0 }
 0x13b   : > { %p928_p3 = pnand %p927_p2, %p923_p13 }
 0x13c   : > { %553 = vperm.xlu0 %901, %v543_v38   ;;  %v280_v38 = vld [vmem:[%s1070_s19 + $0x8] sm:$0xff]  }
 0x13d   : > { %412 = vrot.lane.b32.xlu2 %v404_v29, %s971_s9  ;;  %522 = vperm.xlu1 %902, %v518_v44   ;;  %v655_v44 = vunpack.c.l.bf16 %v280_v38 }
 0x144   : > { %568 = vperm.xlu0 %901, %v546_v39  }
 0x145   : > { %558 = vperm.xlu1 %902, %v544_v47   ;;  %527 = vperm.xlu2 %903, %v519_v50  }
 0x14c   : > { %583 = vperm.xlu0 %901, %v549_v40   ;;  %v658_v40 = vunpack.c.h.bf16 %v282_v23 }
 0x14d   : > { %573 = vperm.xlu1 %902, %v547_v49   ;;  %563 = vperm.xlu2 %903, %v545_v53  }
 0x155   : > { %588 = vperm.xlu1 %902, %v550_v52   ;;  %578 = vperm.xlu2 %903, %v548_v59  }
 0x187   : > { %v483_v42 = vpop.permute.xlu2 %482 }
 0x188   : > { %v492_v43 = vsel %vm484_vm7, %v483_v42, 0 }
 0x189   : > { %507 = vmatpush.bf16.msrb.mxu3 %v492_v43 }
 0x18f   : > { %v481_v45 = vpop.permute.xlu2 %480 }
 0x190   : > { %v489_v46 = vsel %vm484_vm7, %v481_v45, 0 }
 0x191   : > { %508 = vmatpush.bf16.msrb.mxu3 %v489_v46 }
 0x197   : > { %v413_v51 = vpop.permute.xlu2 %412 }
 0x19e   : > { %v415_v48 = vpop.permute.xlu0 %414 }
 0x19f   : > { %803 = vmatpush.bf16.msk.msrb.mxu0 %vm802_vm9, %v415_v48  ;;  %v528_v8 = vpop.permute.xlu2 %527  ;;  %v284_v48 = vld [vmem:[%s1070_s19 + $0x18] sm:$0xff]  }
 0x1a0   : > { %v659_v52 = vunpack.c.l.bf16 %v284_v48 }
 0x1a3   : > { %805 = vmatpush.bf16.msk.msrb.mxu0 %vm802_vm9, %v413_v51 }
 0x1a6   : > { %v411_v54 = vpop.permute.xlu0 %410 }
 0x1a7   : > { %v479_v56 = vpop.permute.xlu1 %478  ;;  %807 = vmatpush.bf16.msk.msrb.mxu0 %vm802_vm9, %v411_v54  ;;  %v564_v25 = vpop.permute.xlu2 %563 }
 0x1a8   : > { %v486_v57 = vsel %vm484_vm7, %v479_v56, 0  ;;  %v656_v56 = vunpack.c.h.bf16 %v280_v38 }
 0x1a9   : > { %509 = vmatpush.bf16.msrb.mxu3 %v486_v57 }
 0x1aa   : > { %808 = vmatmul.msk.bf16.vlgmr.msrb.gmra.mxu0 %vm435_vm6, %v847_v55 }
 0x1ac   : > { %815 = vmatmul.msk.bf16.vlgmr.msrb.gmra.mxu3 %vm435_vm6, %v849_v58 }
 0x1ae   : > { %v554_v20 = vpop.permute.xlu0 %553 }
 0x1af   : > { %v523_v4 = vpop.permute.xlu1 %522  ;;  %v579_v41 = vpop.permute.xlu2 %578 }
 0x1b6   : > { %v569_v37 = vpop.permute.xlu0 %568 }
 0x1b7   : > { %v559_v17 = vpop.permute.xlu1 %558 }
 0x1ba   : > { %v448_v60 = vpop.f32.mrf.mxu3 }
 0x1be   : > { %v584_v53 = vpop.permute.xlu0 %583 }
 0x1bf   : > { %v574_v28 = vpop.permute.xlu1 %573 }
 0x1c2   : > { %v450_v61 = vpop.f32.mrf.mxu3 }
 0x227   : > { %v470_v62 = vpop.f32.mrf.mxu0 }
 0x228   : > { %v471_v0 = vadd.f32 %v470_v62, %v448_v60 }
 0x22f   : > { %v511_v63 = vpop.f32.mrf.mxu3  ;;  %v472_v1 = vpop.f32.mrf.mxu0 }
 0x230   : > { %v516_v2 = vadd.f32 %v511_v63, %v471_v0  ;;  %v473_v3 = vadd.f32 %v472_v1, %v450_v61  ;;  %v660_v63 = vunpack.c.h.bf16 %v284_v48  ;;  %v589_v0 = vpop.permute.xlu1 %588 }
 0x232   : > { %v530_v6 = vadd.f32 %v523_v4, %v516_v2 }
 0x234   : > { %v532_v10 = vmax.f32 %v530_v6, 0.0 }
 0x237   : > { %v513_v5 = vpop.f32.mrf.mxu3 }
 0x238   : > { %v517_v7 = vadd.f32 %v513_v5, %v473_v3 }
 0x23a   : > { %v531_v9 = vadd.f32 %v528_v8, %v517_v7 }
 0x23c   : > { %v533_v11 = vmax.f32 %v531_v9, 0.0 }
 0x23e   : > { %v534_v12 = vpack.c.bf16 %v533_v11, %v532_v10 }
 0x240   : > { %631 = vmatpush.bf16.msra.mxu1 %v534_v12  ;;  %855 = vmatpush.bf16.msra.mxu2 %v534_v12 }
 0x243   : > { %832 = vmatmul.msk.bf16.vlgmr.msra.gmra.mxu1 %vm611_vm10, %v850_v13  ;;  %834 = vmatmul.msk.bf16.vlgmr.msra.gmra.mxu2 %vm611_vm10, %v852_v14 }
 0x253   : > { %833 = vmatmul.msk.bf16.gmra.mxu1 %vm611_vm10, %v851_v15  ;;  %835 = vmatmul.msk.bf16.gmra.mxu2 %vm611_vm10, %v853_v16 }
 0x2c0   : > { %v633_v21 = vpop.f32.mrf.mxu1 }
 0x2c1   : > { %v634_v22 = vadd.f32 %v633_v21, %v554_v20 }
 0x2c3   : > { %v661_v24 = vadd.f32 %v653_v19, %v634_v22 }
 0x2c5   : > { %v669_v26 = vmax.f32 %v661_v24, 0.0 }
 0x2c6   : > { %v643_v29 = vpop.f32.mrf.mxu2 }
 0x2c7   : > { %677 = vst [vmem:[%s1147_s14] sm:$0xff] %v669_v26  ;;  %v644_v30 = vadd.f32 %v643_v29, %v574_v28 }
 0x2c8   : > { %v635_v32 = vpop.f32.mrf.mxu1 }
 0x2c9   : > { %v665_v33 = vadd.f32 %v657_v27, %v644_v30  ;;  %v636_v34 = vadd.f32 %v635_v32, %v559_v17 }
 0x2cb   : > { %v673_v35 = vmax.f32 %v665_v33, 0.0  ;;  %v662_v36 = vadd.f32 %v654_v31, %v636_v34 }
 0x2cd   : > { %681 = vst [vmem:[%s1147_s14 + $0x20] sm:$0xff] %v673_v35  ;;  %v670_v39 = vmax.f32 %v662_v36, 0.0 }
 0x2ce   : > { %v645_v42 = vpop.f32.mrf.mxu2 }
 0x2cf   : > { %678 = vst [vmem:[%s1147_s14 + $0x8] sm:$0xff] %v670_v39  ;;  %v646_v43 = vadd.f32 %v645_v42, %v579_v41 }
 0x2d0   : > { %v638_v45 = vpop.f32.mrf.mxu1 }
 0x2d1   : > { %v666_v46 = vadd.f32 %v658_v40, %v646_v43  ;;  %v639_v47 = vadd.f32 %v638_v45, %v564_v25 }
 0x2d3   : > { %v674_v49 = vmax.f32 %v666_v46, 0.0  ;;  %v663_v50 = vadd.f32 %v655_v44, %v639_v47 }
 0x2d5   : > { %682 = vst [vmem:[%s1147_s14 + $0x28] sm:$0xff] %v674_v49  ;;  %v671_v51 = vmax.f32 %v663_v50, 0.0 }
 0x2d6   : > { %v648_v54 = vpop.f32.mrf.mxu2 }
 0x2d7   : > { %679 = vst [vmem:[%s1147_s14 + $0x10] sm:$0xff] %v671_v51  ;;  %v649_v55 = vadd.f32 %v648_v54, %v584_v53 }
 0x2d8   : > { %v640_v57 = vpop.f32.mrf.mxu1 }
 0x2d9   : > { %v667_v58 = vadd.f32 %v659_v52, %v649_v55  ;;  %v641_v59 = vadd.f32 %v640_v57, %v569_v37 }
 0x2db   : > { %v675_v60 = vmax.f32 %v667_v58, 0.0  ;;  %v664_v61 = vadd.f32 %v656_v56, %v641_v59 }
 0x2dd   : > { %683 = vst [vmem:[%s1147_s14 + $0x30] sm:$0xff] %v675_v60  ;;  %v672_v62 = vmax.f32 %v664_v61, 0.0 }
 0x2de   : > { %v650_v1 = vpop.f32.mrf.mxu2 }
 0x2df   : > { %680 = vst [vmem:[%s1147_s14 + $0x18] sm:$0xff] %v672_v62  ;;  %v651_v2 = vadd.f32 %v650_v1, %v589_v0 }
 0x2e1   : > { %v668_v3 = vadd.f32 %v660_v63, %v651_v2 }
 0x2e3   : > { %v676_v4 = vmax.f32 %v668_v3, 0.0 }
 0x2e5   : > { %684 = vst [vmem:[%s1147_s14 + $0x38] sm:$0xff] %v676_v4 }
 0x2e6   : > { %931 = shalt.err (!%p928_p3)
}
 0x2e7   : > { %s973_s8 = smov 128  }
 0x2e8   : > { %856 = dma.vmem_to_hbm [thread:$0]  (%p1052_p5), %s699_s18, 1024, %s701_s20, %s686_s28, %s973_s8, %s973_s8, %s971_s9  }
 0x2e9 PF: > { %p862_p4 = scmp.ge.s32.totalorder %s966_s27, 2  ;;  %s715_s14 = sand.u32 1, %s954_s24  }
 0x2ea   : > { %s716_s16 = scalar_lea.sflag [#allocation3], %s715_s14 }
 0x2eb   : > { %p859_p7 = pnand %p862_p4, %p1056_p6 }
 0x2ed   : > { %p860_p8 = pneg %p859_p7 }
 0x2ef   : > { %949 = dma.done.wait (%p860_p8), %s716_s16, 1024  }
 0x2f0   : > { %951 = vsyncadd (%p860_p8), %s716_s16, 4294966272  ;;  %p17_p9 = scmp.ge.s32.totalorder %s1039_s30, 4   ;;  %s1204_s24 = smov %s958_s25 }
 0x2f1   : > { %s1205_s25 = smov %s962_s26  ;;  %s1206_s26 = smov %s1050_s10 }
 0x2f2   : > { %s1207_s27 = smov %s1039_s30  ;;  %19 = sbr.rel (!%p17_p9) target bundleno = 3 (0x3), region = 85 }
 0x2f7   :  { %722 = vsyncpa [#allocation3], 1 }
 0x2f8   :  { %724 = vsyncpa [#allocation3 + $0x1], 1 }

</bundles_post_ra>
